<compile_context>
chip_gen: v7x
topology: tpu7x:2x2x1
jax: 0.10.0
libtpu: 0.0.40
codegen_flags: <defaults>
</compile_context>

<pallas_src>
import functools

import jax
import jax.numpy as jnp
from jax import lax
from jax.experimental import pallas as pl
from jax.experimental.pallas import tpu as pltpu


def _eeblock_kernel(mask_ref, x_ref, wg_ref, off_ref, o_ref, *, W, use_bf16):
    x = x_ref[0]                       # (C, L) f32, lane-dense; L = tile_rows * W
    m = mask_ref[...]                  # (4, L) f32 0/1 edge masks
    L = x.shape[-1]

    # Tap operands: non-negative XLU lane rotations + precomputed masks.
    # Wrapped-around lanes are zeroed; the cross-tile vertical halo rows are
    # added back by the wrapper.
    x_wm1 = pltpu.roll(x, shift=1, axis=1) * m[0:1, :]        # x[:, w-1]
    x_wp1 = pltpu.roll(x, shift=L - 1, axis=1) * m[1:2, :]    # x[:, w+1]
    x_hm1 = pltpu.roll(x, shift=W, axis=1) * m[2:3, :]        # x[h-1, :]
    x_hp1 = pltpu.roll(x, shift=L - W, axis=1) * m[3:4, :]    # x[h+1, :]

    dtype = jnp.bfloat16 if use_bf16 else jnp.float32
    cast = lambda a: a.astype(dtype)

    # Gate-scaled weights built per batch in the wrapper:
    #   wg[0] = g13*w13_ctr + g31*w31_ctr + I   (carries the "+ x" residual)
    #   wg[1] = g13*w13[-1], wg[2] = g13*w13[+1]
    #   wg[3] = g31*w31[-1], wg[4] = g31*w31[+1]
    acc = jnp.dot(cast(wg_ref[0, 0]), cast(x), preferred_element_type=jnp.float32)
    acc += jnp.dot(cast(wg_ref[0, 1]), cast(x_wm1), preferred_element_type=jnp.float32)
    acc += jnp.dot(cast(wg_ref[0, 2]), cast(x_wp1), preferred_element_type=jnp.float32)
    acc += jnp.dot(cast(wg_ref[0, 3]), cast(x_hm1), preferred_element_type=jnp.float32)
    acc += jnp.dot(cast(wg_ref[0, 4]), cast(x_hp1), preferred_element_type=jnp.float32)

    # Folded gated conv biases: single per-channel broadcast add.
    o_ref[0] = (acc + off_ref[0]).astype(o_ref.dtype)


def _vmem_budget():
    """(vmem_limit_bytes, per-x-tile byte budget), derived from the chip."""
    try:
        cap = int(pltpu.get_tpu_info().vmem_capacity_bytes)
        if cap <= 0:
            cap = 128 * 1024 * 1024
    except Exception:
        cap = 128 * 1024 * 1024
    # ~48 MiB on v7x (64 MiB/core), ~96-100 MiB on v5e/v6e (128 MiB/core).
    vmem_limit = max(min(100 * 1024 * 1024, (cap * 3) // 4), 16 * 1024 * 1024)
    # Live per step ~= 2x2 pipeline buffers (x in + out) + 4 shifted copies
    # + f32 accumulator + compiler slack  ->  ~12 tile-sized buffers.
    return vmem_limit, max(vmem_limit // 12, 64 * 1024)


def _pick_tile_rows(H, W, C, tile_budget_bytes, prefer_two_tiles):
    """Largest row-tile th dividing H with lane-aligned th*W (or th == H) whose
    f32 tile fits the per-tile VMEM budget."""
    bytes_per_row = W * C * 4
    cands = [d for d in range(1, H + 1)
             if H % d == 0 and ((d * W) % 128 == 0 or d == H)]
    fits = [d for d in cands if d * bytes_per_row <= tile_budget_bytes] or [min(cands)]
    if prefer_two_tiles:               # keep >= 2 parallel grid slices (v7x megacore)
        two = [d for d in fits if H // d >= 2]
        if two:
            return max(two)
    return max(fits)


def eeblock_pallas(y, x, w13, b13, w31, b31, tile_rows=None, matmul_in_bf16=None):
    """EEblock forward.  y, x: (B, C, H, W).  w13/w31: (3, Cin, Cout), taps
    ordered [-1, 0, +1].  b13/b31: (1, C).  Returns (B, C, H, W) float32."""
    B, C, H, W = x.shape
    x = x.astype(jnp.float32)
    y = y.astype(jnp.float32)
    if matmul_in_bf16 is None:
        matmul_in_bf16 = C >= 64

    # ---- y branch reduced algebraically: sigmoid(mean(conv(y))) needs only
    # per-(batch, channel) spatial sums of y plus boundary row/col sums.
    s_tot = jnp.sum(y, axis=(2, 3))                    # (B, C)
    s_row0 = jnp.sum(y[:, :, 0, :], axis=-1)
    s_rowL = jnp.sum(y[:, :, H - 1, :], axis=-1)
    s_col0 = jnp.sum(y[:, :, :, 0], axis=-1)
    s_colL = jnp.sum(y[:, :, :, W - 1], axis=-1)
    inv_hw = 1.0 / (H * W)
    mean13 = ((s_tot - s_colL) @ w13[0] + s_tot @ w13[1]
              + (s_tot - s_col0) @ w13[2]) * inv_hw + b13
    mean31 = ((s_tot - s_rowL) @ w31[0] + s_tot @ w31[1]
              + (s_tot - s_row0) @ w31[2]) * inv_hw + b31
    map_y13 = jax.nn.sigmoid(mean13)                   # gates conv31(x)
    map_y31 = jax.nn.sigmoid(mean31)                   # gates conv13(x)

    # ---- fold gates, the "+ x" residual and the conv biases into weights.
    wt13 = jnp.transpose(w13, (0, 2, 1))               # (3, Cout, Cin)
    wt31 = jnp.transpose(w31, (0, 2, 1))
    g13 = map_y31[:, :, None]                          # scales conv13 output rows
    g31 = map_y13[:, :, None]                          # scales conv31 output rows
    eye = jnp.eye(C, dtype=jnp.float32)
    w_ctr = g13 * wt13[1] + g31 * wt31[1] + eye        # centre taps + residual
    wg = jnp.stack([w_ctr,
                    g13 * wt13[0], g13 * wt13[2],
                    g31 * wt31[0], g31 * wt31[2]], axis=1)       # (B, 5, C, C)
    off = (map_y31 * b13 + map_y13 * b31)[:, :, None]  # (B, C, 1) gated biases
    if matmul_in_bf16:
        wg = wg.astype(jnp.bfloat16)

    # ---- tiling (generation-aware VMEM budget).
    vmem_limit, tile_budget = _vmem_budget()
    th = tile_rows if tile_rows is not None else _pick_tile_rows(
        H, W, C, tile_budget, prefer_two_tiles=(B == 1))
    assert H % th == 0, "tile_rows must divide H"
    nh = H // th
    L = th * W

    # Precomputed 0/1 edge masks, one grid-invariant (4, L) block.
    lane = jnp.arange(L, dtype=jnp.int32)
    col = lane % W
    row = lane // W
    masks = jnp.stack([(col != 0), (col != W - 1),
                       (row != 0), (row != th - 1)]).astype(jnp.float32)

    x2d = x.reshape(B, C, H * W)                       # free reshape; lane-dense

    out2d = pl.pallas_call(
        functools.partial(_eeblock_kernel, W=W, use_bf16=matmul_in_bf16),
        out_shape=jax.ShapeDtypeStruct((B, C, H * W), jnp.float32),
        grid=(B, nh),
        in_specs=[
            pl.BlockSpec((4, L), lambda b, i: (0, 0)),              # masks (invariant)
            pl.BlockSpec((1, C, L), lambda b, i: (b, 0, i)),        # x row tile
            pl.BlockSpec((1, 5, C, C), lambda b, i: (b, 0, 0, 0)),  # weights (per batch)
            pl.BlockSpec((1, C, 1), lambda b, i: (b, 0, 0)),        # per-channel offset
        ],
        out_specs=pl.BlockSpec((1, C, L), lambda b, i: (b, 0, i)),
        compiler_params=pltpu.CompilerParams(
            dimension_semantics=("parallel", "parallel"),
            vmem_limit_bytes=int(vmem_limit),
        ),
    )(masks, x2d, wg, off)
    out = out2d.reshape(B, C, H, W)

    # ---- cross-tile vertical halo: the kernel zeroed the h+-1 taps at tile
    # boundaries; add the missing (nh-1) boundary rows back (tiny einsum).
    if nh > 1:
        gate31 = map_y13[:, :, None, None]
        x_above = x[:, :, th - 1:H - 1:th, :]          # rows just above tile tops
        x_below = x[:, :, th:H:th, :]                  # rows just below tile bottoms
        corr_top = jnp.einsum('bcrw,co->borw', x_above, w31[0]) * gate31
        corr_bot = jnp.einsum('bcrw,co->borw', x_below, w31[2]) * gate31
        out = out.at[:, :, th:H:th, :].add(corr_top)
        out = out.at[:, :, th - 1:H - 1:th, :].add(corr_bot)
    return out


def eeblock_reference(y_nchw, x_nchw, w13, b13, w31, b31):
    """Pure-JAX NCHW reference matching torch semantics (cross-correlation)."""
    w13_oihw = jnp.transpose(w13, (2, 1, 0))[:, :, None, :]
    w31_oihw = jnp.transpose(w31, (2, 1, 0))[:, :, :, None]

    def conv(a, w, bias, pad):
        o = lax.conv_general_dilated(
            a, w, window_strides=(1, 1), padding=pad,
            dimension_numbers=("NCHW", "OIHW", "NCHW"))
        return o + bias.reshape(1, -1, 1, 1)

    x1 = conv(x_nchw, w13_oihw, b13, [(0, 0), (1, 1)])
    x2 = conv(x_nchw, w31_oihw, b31, [(1, 1), (0, 0)])
    y1 = conv(y_nchw, w13_oihw, b13, [(0, 0), (1, 1)])
    y2 = conv(y_nchw, w31_oihw, b31, [(1, 1), (0, 0)])
    map_y13 = jax.nn.sigmoid(jnp.mean(y1, axis=(2, 3), keepdims=True))
    map_y31 = jax.nn.sigmoid(jnp.mean(y2, axis=(2, 3), keepdims=True))
    return x1 * map_y31 + x2 * map_y13 + x_nchw


if __name__ == "__main__":
    B, C, H, W = 2, 4, 16, 16
    key = jax.random.PRNGKey(0)
    k_x, k_y, k_w13, k_b13, k_w31, k_b31 = jax.random.split(key, 6)

    x = jax.random.normal(k_x, (B, C, H, W), jnp.float32)
    y = jax.random.normal(k_y, (B, C, H, W), jnp.float32)

    # Deterministic init mimicking nn.Conv2d default (uniform +/- 1/sqrt(fan_in)).
    bound = 1.0 / jnp.sqrt(jnp.float32(C * 3))
    w13 = jax.random.uniform(k_w13, (3, C, C), jnp.float32, -bound, bound)  # (tap, Cin, Cout)
    b13 = jax.random.uniform(k_b13, (1, C), jnp.float32, -bound, bound)
    w31 = jax.random.uniform(k_w31, (3, C, C), jnp.float32, -bound, bound)
    b31 = jax.random.uniform(k_b31, (1, C), jnp.float32, -bound, bound)

    ref = eeblock_reference(y, x, w13, b13, w31, b31)

    # Multi-tile path (2 row-tiles -> exercises the cross-tile halo correction).
    out_tiled = jax.block_until_ready(
        eeblock_pallas(y, x, w13, b13, w31, b31, tile_rows=8))
    # Auto tile size (whole image per tile at this small shape).
    out_auto = jax.block_until_ready(eeblock_pallas(y, x, w13, b13, w31, b31))

    assert out_tiled.shape == (B, C, H, W)
    assert jnp.allclose(out_tiled, ref, atol=1e-5, rtol=1e-5), "mismatch (tiled) vs reference"
    assert jnp.allclose(out_auto, ref, atol=1e-5, rtol=1e-5), "mismatch (auto) vs reference"

    print("KERNEL_OK")
</pallas_src>

<mosaic_0001>
module attributes {stable_mosaic.version = 11 : i64} {
  func.func @_eeblock_kernel(%arg0: i32, %arg1: i32, %arg2: memref<4x128xf32, #tpu.memory_space<vmem>>, %arg3: memref<1x4x128xf32, #tpu.memory_space<vmem>>, %arg4: memref<1x5x4x4xf32, #tpu.memory_space<vmem>>, %arg5: memref<1x4x1xf32, #tpu.memory_space<vmem>>, %arg6: memref<1x4x128xf32, #tpu.memory_space<vmem>>) attributes {dimension_semantics = [#tpu.dimension_semantics<parallel>, #tpu.dimension_semantics<parallel>], iteration_bounds = array<i64: 2, 2>, scalar_prefetch = 0 : i64, scratch_operands = 0 : i64, tpu.core_type = #tpu.core_type<tc>, window_params = [{pipeline_mode = #tpu.pipeline_mode<synchronous>, transform_indices = @transform_0, window_bounds = array<i64: 4, 128>}, {transform_indices = @transform_1, window_bounds = array<i64: 1, 4, 128>}, {transform_indices = @transform_2, window_bounds = array<i64: 1, 5, 4, 4>}, {transform_indices = @transform_3, window_bounds = array<i64: 1, 4, 1>}, {transform_indices = @transform_4, window_bounds = array<i64: 1, 4, 128>}]} {
    %c0 = arith.constant 0 : index
    %c0_0 = arith.constant 0 : index
    %c0_1 = arith.constant 0 : index
    %0 = vector.load %arg3[%c0, %c0_0, %c0_1] : memref<1x4x128xf32, #tpu.memory_space<vmem>>, vector<1x4x128xf32>
    %1 = vector.shape_cast %0 : vector<1x4x128xf32> to vector<4x128xf32>
    %c0_2 = arith.constant 0 : index
    %c0_3 = arith.constant 0 : index
    %2 = vector.load %arg2[%c0_2, %c0_3] : memref<4x128xf32, #tpu.memory_space<vmem>>, vector<4x128xf32>
    %c1_i32 = arith.constant 1 : i32
    %3 = tpu.dynamic_rotate %1 by %c1_i32 dim 1 : vector<4x128xf32>, i32 -> vector<4x128xf32>
    %4 = vector.extract_strided_slice %2 {offsets = [0, 0], sizes = [1, 128], strides = [1, 1]} : vector<4x128xf32> to vector<1x128xf32>
    %5 = vector.broadcast %4 : vector<1x128xf32> to vector<4x128xf32>
    %6 = arith.mulf %3, %5 : vector<4x128xf32>
    %c127_i32 = arith.constant 127 : i32
    %7 = tpu.dynamic_rotate %1 by %c127_i32 dim 1 : vector<4x128xf32>, i32 -> vector<4x128xf32>
    %8 = vector.extract_strided_slice %2 {offsets = [1, 0], sizes = [1, 128], strides = [1, 1]} : vector<4x128xf32> to vector<1x128xf32>
    %9 = vector.broadcast %8 : vector<1x128xf32> to vector<4x128xf32>
    %10 = arith.mulf %7, %9 : vector<4x128xf32>
    %c16_i32 = arith.constant 16 : i32
    %11 = tpu.dynamic_rotate %1 by %c16_i32 dim 1 : vector<4x128xf32>, i32 -> vector<4x128xf32>
    %12 = vector.extract_strided_slice %2 {offsets = [2, 0], sizes = [1, 128], strides = [1, 1]} : vector<4x128xf32> to vector<1x128xf32>
    %13 = vector.broadcast %12 : vector<1x128xf32> to vector<4x128xf32>
    %14 = arith.mulf %11, %13 : vector<4x128xf32>
    %c112_i32 = arith.constant 112 : i32
    %15 = tpu.dynamic_rotate %1 by %c112_i32 dim 1 : vector<4x128xf32>, i32 -> vector<4x128xf32>
    %16 = vector.extract_strided_slice %2 {offsets = [3, 0], sizes = [1, 128], strides = [1, 1]} : vector<4x128xf32> to vector<1x128xf32>
    %17 = vector.broadcast %16 : vector<1x128xf32> to vector<4x128xf32>
    %18 = arith.mulf %15, %17 : vector<4x128xf32>
    %c0_4 = arith.constant 0 : index
    %c0_5 = arith.constant 0 : index
    %c0_6 = arith.constant 0 : index
    %c0_7 = arith.constant 0 : index
    %19 = vector.load %arg4[%c0_4, %c0_5, %c0_6, %c0_7] : memref<1x5x4x4xf32, #tpu.memory_space<vmem>>, vector<1x1x4x4xf32>
    %20 = vector.shape_cast %19 : vector<1x1x4x4xf32> to vector<4x4xf32>
    %cst = arith.constant dense<0.000000e+00> : vector<4x128xf32>
    %21 = tpu.matmul %20, %1, %cst {dimension_numbers = #tpu.dot_dimension_numbers<[1], [0], [0], [1], [0, 0, 1, 1], [], []>} : vector<4x4xf32>, vector<4x128xf32>, vector<4x128xf32> -> vector<4x128xf32>
    %c0_8 = arith.constant 0 : index
    %c1 = arith.constant 1 : index
    %c0_9 = arith.constant 0 : index
    %c0_10 = arith.constant 0 : index
    %22 = vector.load %arg4[%c0_8, %c1, %c0_9, %c0_10] : memref<1x5x4x4xf32, #tpu.memory_space<vmem>>, vector<1x1x4x4xf32>
    %23 = vector.shape_cast %22 : vector<1x1x4x4xf32> to vector<4x4xf32>
    %cst_11 = arith.constant dense<0.000000e+00> : vector<4x128xf32>
    %24 = tpu.matmul %23, %6, %cst_11 {dimension_numbers = #tpu.dot_dimension_numbers<[1], [0], [0], [1], [0, 0, 1, 1], [], []>} : vector<4x4xf32>, vector<4x128xf32>, vector<4x128xf32> -> vector<4x128xf32>
    %25 = arith.addf %21, %24 : vector<4x128xf32>
    %c0_12 = arith.constant 0 : index
    %c2 = arith.constant 2 : index
    %c0_13 = arith.constant 0 : index
    %c0_14 = arith.constant 0 : index
    %26 = vector.load %arg4[%c0_12, %c2, %c0_13, %c0_14] : memref<1x5x4x4xf32, #tpu.memory_space<vmem>>, vector<1x1x4x4xf32>
    %27 = vector.shape_cast %26 : vector<1x1x4x4xf32> to vector<4x4xf32>
    %cst_15 = arith.constant dense<0.000000e+00> : vector<4x128xf32>
    %28 = tpu.matmul %27, %10, %cst_15 {dimension_numbers = #tpu.dot_dimension_numbers<[1], [0], [0], [1], [0, 0, 1, 1], [], []>} : vector<4x4xf32>, vector<4x128xf32>, vector<4x128xf32> -> vector<4x128xf32>
    %29 = arith.addf %25, %28 : vector<4x128xf32>
    %c0_16 = arith.constant 0 : index
    %c3 = arith.constant 3 : index
    %c0_17 = arith.constant 0 : index
    %c0_18 = arith.constant 0 : index
    %30 = vector.load %arg4[%c0_16, %c3, %c0_17, %c0_18] : memref<1x5x4x4xf32, #tpu.memory_space<vmem>>, vector<1x1x4x4xf32>
    %31 = vector.shape_cast %30 : vector<1x1x4x4xf32> to vector<4x4xf32>
    %cst_19 = arith.constant dense<0.000000e+00> : vector<4x128xf32>
    %32 = tpu.matmul %31, %14, %cst_19 {dimension_numbers = #tpu.dot_dimension_numbers<[1], [0], [0], [1], [0, 0, 1, 1], [], []>} : vector<4x4xf32>, vector<4x128xf32>, vector<4x128xf32> -> vector<4x128xf32>
    %33 = arith.addf %29, %32 : vector<4x128xf32>
    %c0_20 = arith.constant 0 : index
    %c4 = arith.constant 4 : index
    %c0_21 = arith.constant 0 : index
    %c0_22 = arith.constant 0 : index
    %34 = vector.load %arg4[%c0_20, %c4, %c0_21, %c0_22] : memref<1x5x4x4xf32, #tpu.memory_space<vmem>>, vector<1x1x4x4xf32>
    %35 = vector.shape_cast %34 : vector<1x1x4x4xf32> to vector<4x4xf32>
    %cst_23 = arith.constant dense<0.000000e+00> : vector<4x128xf32>
    %36 = tpu.matmul %35, %18, %cst_23 {dimension_numbers = #tpu.dot_dimension_numbers<[1], [0], [0], [1], [0, 0, 1, 1], [], []>} : vector<4x4xf32>, vector<4x128xf32>, vector<4x128xf32> -> vector<4x128xf32>
    %37 = arith.addf %33, %36 : vector<4x128xf32>
    %c0_24 = arith.constant 0 : index
    %c0_25 = arith.constant 0 : index
    %c0_26 = arith.constant 0 : index
    %38 = vector.load %arg5[%c0_24, %c0_25, %c0_26] : memref<1x4x1xf32, #tpu.memory_space<vmem>>, vector<1x4x1xf32>
    %39 = vector.shape_cast %38 : vector<1x4x1xf32> to vector<4x1xf32>
    %40 = vector.broadcast %39 : vector<4x1xf32> to vector<4x128xf32>
    %41 = arith.addf %37, %40 : vector<4x128xf32>
    %c0_27 = arith.constant 0 : index
    %c0_28 = arith.constant 0 : index
    %c0_29 = arith.constant 0 : index
    %42 = vector.load %arg6[%c0_27, %c0_28, %c0_29] : memref<1x4x128xf32, #tpu.memory_space<vmem>>, vector<1x4x128xf32>
    %43 = vector.shape_cast %42 : vector<1x4x128xf32> to vector<4x128xf32>
    %44 = vector.shape_cast %41 : vector<4x128xf32> to vector<1x4x128xf32>
    tpu.vector_store %arg6[%c0_27, %c0_28, %c0_29], %44 {strides = array<i32>} : memref<1x4x128xf32, #tpu.memory_space<vmem>>, vector<1x4x128xf32>,
    return
  }
  func.func @transform_0(%arg0: i32, %arg1: i32) -> (i32, i32) {
    %c0_i32 = arith.constant 0 : i32
    %c0_i32_0 = arith.constant 0 : i32
    %c0_i32_1 = arith.constant 0 : i32
    return %c0_i32, %c0_i32_0 : i32, i32
  }
  func.func @transform_1(%arg0: i32, %arg1: i32) -> (i32, i32, i32) {
    %c0_i32 = arith.constant 0 : i32
    %c0_i32_0 = arith.constant 0 : i32
    return %arg0, %c0_i32, %arg1 : i32, i32, i32
  }
  func.func @transform_2(%arg0: i32, %arg1: i32) -> (i32, i32, i32, i32) {
    %c0_i32 = arith.constant 0 : i32
    %c0_i32_0 = arith.constant 0 : i32
    %c0_i32_1 = arith.constant 0 : i32
    %c0_i32_2 = arith.constant 0 : i32
    return %arg0, %c0_i32, %c0_i32_0, %c0_i32_1 : i32, i32, i32, i32
  }
  func.func @transform_3(%arg0: i32, %arg1: i32) -> (i32, i32, i32) {
    %c0_i32 = arith.constant 0 : i32
    %c0_i32_0 = arith.constant 0 : i32
    %c0_i32_1 = arith.constant 0 : i32
    return %arg0, %c0_i32, %c0_i32_0 : i32, i32, i32
  }
  func.func @transform_4(%arg0: i32, %arg1: i32) -> (i32, i32, i32) {
    %c0_i32 = arith.constant 0 : i32
    %c0_i32_0 = arith.constant 0 : i32
    return %arg0, %c0_i32, %arg1 : i32, i32, i32
  }
}

</mosaic_0001>

<bundles_post_ra>
// kernel: tpu_custom_call.1
= control target key start
LH: loop header
LB: loop body
LE: loop exit
PB: predicated region body
PF: predicated region fallthrough
CT: control target
= control target key end

     0   :  { %s1797_s0 = inlined_call_operand.hbm [shape: f32[4,128], index: 0, kind: input, shape index: {}]   ;;  %s1798_s1 = inlined_call_operand.hbm [shape: f32[2,4,256], index: 1, kind: input, shape index: {}]   ;;  %s1799_s2 = inlined_call_operand.hbm [shape: f32[2,5,4,4], index: 2, kind: input, shape index: {}]   ;;  %s1800_s3 = inlined_call_operand.hbm [shape: f32[2,4,1], index: 3, kind: input, shape index: {}]   ;;  %s1801_s4 = inlined_call_operand.hbm [shape: f32[2,4,256], index: 4, kind: output, shape index: {}]  }
   0x1   :  { %1815 = sst [smem:[#allocation25_spill]] %s1798_s1 }
   0x2   :  { %1816 = sst [smem:[#allocation26_spill]] %s1801_s4 }
   0x3   :  { %9 = vsyncpa [#allocation3], 0 }
   0x4   :  { %10 = vsyncpa [#allocation6], 0 }
   0x5   :  { %12 = vsyncpa [#allocation6 + $0x1], 0 }
   0x6   :  { %13 = vsyncpa [#allocation9], 0 }
   0x7   :  { %15 = vsyncpa [#allocation9 + $0x1], 0 }
   0x8   :  { %16 = vsyncpa [#allocation4], 0 }
   0x9   :  { %18 = vsyncpa [#allocation4 + $0x1], 0  ;;  %s1405_s15 = smov 0   ;;  %s1407_s16 = smov 0  }
   0xa   :  { %s1409_s17 = smov 0   ;;  %s1411_s18 = smov 0  }
   0xb   :  { %s1413_s19 = smov 0   ;;  %s1415_s20 = smov 0  }
   0xc   :  { %s1417_s21 = smov 0   ;;  %s1419_s22 = smov 0  }
   0xd   :  { %s1421_s23 = smov 0   ;;  %s1423_s24 = smov 0  }
   0xe   :  { %s1425_s25 = smov 0  }
   0xf LB: > { %1817 = sst [smem:[#allocation16_spill]] %s1332_s17  ;;  %s33_s26 = sadd.s32 1, %s1356_s23  ;;  %s1364_s25 = sphi %s1425_s25, %s24_s25   ;;  %s1360_s24 = sphi %s1423_s24, %s1862_s24   ;;  %s1356_s23 = sphi %s1421_s23, %s1861_s23   ;;  %s1352_s22 = sphi %s1419_s22, %s1860_s22   ;;  %s1348_s21 = sphi %s1417_s21, %s1853_s21   ;;  %s1344_s20 = sphi %s1415_s20, %s1852_s20   ;;  %s1340_s19 = sphi %s1413_s19, %s1859_s19   ;;  %s1336_s18 = sphi %s1411_s18, %s1858_s18   ;;  %s1332_s17 = sphi %s1409_s17, %s1850_s17   ;;  %s1328_s16 = sphi %s1407_s16, %s1857_s16   ;;  %s1324_s15 = sphi %s1405_s15, %s1856_s15  }
  0x10   : > { %1818 = sst [smem:[#allocation17_spill]] %s1344_s20  ;;  %s36_s27 = sadd.s32 1, %s1360_s24 }
  0x11   : > { %1819 = sst [smem:[#allocation18_spill]] %s1348_s21  ;;  %p34_p0 = scmp.ge.s32.totalorder %s33_s26, 2 }
  0x12   : > { %1820 = sst [smem:[#allocation19_spill]] %s1352_s22  ;;  %s66_s28 = sadd.s32 1, %s1344_s20 }
  0x13   : > { %1821 = sst [smem:[#allocation20_spill]] %s1356_s23  ;;  %p1805_p1 = scmp.ne.s32.totalorder %s1344_s20, %s1340_s19 }
  0x14   : > { %p74_p2 = scmp.eq.s32.totalorder %s1364_s25, 0  ;;  %s1864_s26 = smov (%p34_p0, %s33_s26), 0 }
  0x15   : > { %1822 = sst [smem:[#allocation21_spill]] %s1864_s26  ;;  %s1866_s27 = smov (!%p34_p0, %s36_s27), %s1360_s24 }
  0x16   : > { %s62_s29 = ssub.s32 %s1356_s23, %s1864_s26  ;;  %p1474_p3 = por %p74_p2, %p1805_p1 }
  0x17   : > { %p38_p4 = scmp.ge.s32.totalorder %s1866_s27, 2  ;;  %s92_s5 = sadd.s32 1, %s1332_s17 }
  0x18   : > { %p99_p5 = scmp.ne.s32.totalorder %s1332_s17, %s1328_s16  ;;  %p1010_p7 = scmp.lt.s32.totalorder %s1364_s25, 4 }
  0x19   : > { %s1868_s27 = smov (%p38_p4, %s1866_s27), 0  ;;  %s194_s8 = sand.u32 1, %s1364_s25  }
  0x1a   : > { %1824 = sst [smem:[#allocation22_spill]] %s1868_s27  ;;  %p1483_p6 = por %p99_p5, %p74_p2 }
  0x1b   : > { %s61_s7 = ssub.s32 %s1360_s24, %s1868_s27  ;;  %s196_s12 = sand.u32 1, %s1344_s20  }
  0x1c   : > { %s63_s9 = sor.u32 %s62_s29, %s61_s7  ;;  %p90_p8 = scmp.eq.s32.totalorder %s61_s7, 0 }
  0x1d   : > { %p64_p9 = scmp.eq.s32.totalorder %s63_s9, 0  ;;  %s912_s13 = sshll.u32 %s1360_s24, 1 }
  0x1e   : > { %s1492_s10 = scalar_select %p90_p8, %s1332_s17, %s92_s5  }
  0x1f   : > { %s1495_s11 = scalar_select %p64_p9, %s1344_s20, %s66_s28  }
  0x20   : > { %1826 = sst [smem:[#allocation23_spill]] %s1492_s10  ;;  %s911_s14 = sshll.u32 %s196_s12, 2 }
  0x21   : > { %1827 = sst [smem:[#allocation24_spill]] %s1495_s11  ;;  %s203_s26 = sadd.s32 %s1356_s23, %s912_s13 }
  0x22   : > { %s913_s4 = sshll.u32 %s203_s26, 6  ;;  %s1828_s1 = sld [smem:[#allocation25_spill]] }
  0x23   : > { %s198_s29 = scalar_lea.vmem [#allocation5], %s911_s14  ;;  %p1511_p10 = pnand %p1010_p7, %p1474_p3 }
  0x24   : > { %s207_s7 = sshll.u32 %s198_s29, 4  ;;  %p1519_p11 = pnand %p1010_p7, %p1483_p6  ;;  %s1505_s7 = int_to_ptr.vmem [resolvable:$true] %s207_s7 }
  0x25   : > { %s1523_s21 = scalar_lea.sflag [#allocation6], %s194_s8  ;;  %p1114_p13 = pneg %p1511_p10 }
  0x28   : > { %s1503_s27 = scalar_lea.hbm %s1828_s1, %s913_s4  ;;  %s1117_s5 = scalar_lea.hbm %s1828_s1, 256 }
  0x29   : > { %s1830_s4 = scalar_select %p1519_p11, 1, 0 }
  0x2a   : > { %s1112_s22 = scalar_lea.hbm %s1503_s27, 64  ;;  %p1118_p3 = scmp.lt.u32.totalorder %s1503_s27, %s1828_s1 }
  0x2b   : > { %p1113_p12 = scmp.ne.s32.totalorder %s1503_s27, %s1112_s22  ;;  %p1119_p4 = scmp.lt.u32.totalorder %s1117_s5, %s1112_s22 }
  0x2c   : > { %p1121_p6 = scmp.lt.u32.totalorder %s1112_s22, %s1503_s27 }
  0x2d   : > { %p1115_p0 = pnand %p1114_p13, %p1113_p12  ;;  %p1120_p5 = por %p1119_p4, %p1118_p3 }
  0x2f   : > { %p1116_p2 = pneg %p1115_p0  ;;  %p1122_p7 = por %p1121_p6, %p1120_p5 }
  0x31   : > { %p1123_p8 = pnand %p1122_p7, %p1116_p2 }
  0x33   : > { %1126 = shalt.err (!%p1123_p8)
}
  0x34   : > { %s1127_s8 = scalar_lea.vmem %s1505_s7, 64  ;;  %s1366_s12 = smov [#allocation5]  }
  0x35   : > { %p1128_p9 = scmp.ne.s32.totalorder %s1505_s7, %s1127_s8  ;;  %s1132_s13 = sshll.u32 %s1366_s12, 4  ;;  %s1133_s13 = int_to_ptr.vmem [resolvable:$false] %s1132_s13 }
  0x36   : > { %s1134_s14 = scalar_lea.vmem %s1133_s13, 128  ;;  %p1135_p1 = scmp.lt.s32.totalorder %s1505_s7, %s1133_s13 }
  0x37   : > { %p1130_p12 = pnand %p1128_p9, %p1114_p13  ;;  %p1136_p3 = scmp.lt.s32.totalorder %s1134_s14, %s1127_s8 }
  0x39   : > { %p1131_p0 = pneg %p1130_p12  ;;  %p1137_p4 = por %p1136_p3, %p1135_p1 }
  0x3b   : > { %p1138_p5 = pnand %p1137_p4, %p1131_p0 }
  0x3d   : > { %1141 = shalt.err (!%p1138_p5)
}
  0x3e   : > { %998 = dma.hbm_to_vmem [thread:$0]  (!%p1511_p10), %s1503_s27, 64, %s1505_s7, %s1523_s21  }
  0x3f   : > { %s1552_s29 = sadd.s32 4294967295, %s1364_s25   ;;  %s907_s28 = sadd.s32 4294967294, %s1364_s25  }
  0x40   : > { %p79_p1 = scmp.ne.s32.totalorder %s1340_s19, %s1336_s18  ;;  %p1809_p13 = scmp.eq.s32.totalorder %s1552_s29, 0 }
  0x41   : > { %p105_p2 = scmp.ne.s32.totalorder %s1328_s16, %s1324_s15  ;;  %p157_p6 = scmp.eq.s32.totalorder %s1552_s29, 3 }
  0x42   : > { %p163_p7 = scmp.eq.s32.totalorder %s907_s28, 3  ;;  %p1563_p8 = por %p1809_p13, %p79_p1 }
  0x43   : > { %p1569_p10 = por %p105_p2, %p1809_p13  ;;  %p1833_p9 = scmp.ne.s32.totalorder %s1344_s20, %s1340_s19 }
  0x44   : > { %s1831_s22 = scalar_select %p1563_p8, 1, 0 }
  0x45   : > { %s1832_s27 = scalar_select %p1569_p10, 1, 0 }
  0x46   : > { %p1576_p12 = por %p157_p6, %p1833_p9  ;;  %p1580_p0 = por %p163_p7, %p79_p1 }
  0x47   : > { %p908_p3 = scmp.ge.s32.totalorder %s1364_s25, 1  ;;  %p170_p4 = scmp.lt.s32.totalorder %s1364_s25, 5 }
  0x48   : > { %s1834_s7 = scalar_select %p1576_p12, 1, 0 }
  0x49   : > { %s1835_s15 = scalar_select %p1580_p0, 1, 0 }
  0x4a   : > { %p1586_p5 = pnand %p908_p3, %p170_p4  ;;  %s1367_s30 = smov [#allocation2]  }
  0x4b   : > { %s183_s5 = sshll.u32 %s1367_s30, 4  ;;  %s1591_s6 = sand.u32 1, %s1332_s17   ;;  %s184_s5 = int_to_ptr.vmem [resolvable:$true] %s183_s5 }
  0x4c   : > { %s1836_s26 = scalar_select %p1586_p5, 1, 0 }
  0x4d   : > { %p991_p2 = pneg %p1586_p5  ;;  %s976_s9 = smul.u32 20, %s1591_s6 }
  0x4e   : > { %s977_s8 = smul.u32 320, %s1360_s24  ;;  %s1142_s20 = scalar_lea.hbm %s1797_s0, 64 }
  0x4f   : > { %p1599_p1 = pnand %p991_p2, %p1809_p13  ;;  %s218_s30 = scalar_lea.vmem [#allocation7], %s976_s9 }
  0x50   : > { %s1606_s28 = scalar_lea.hbm %s1799_s2, %s977_s8  ;;  %s225_s1 = sshll.u32 %s218_s30, 4  ;;  %s1608_s1 = int_to_ptr.vmem [resolvable:$true] %s225_s1 }
  0x51   : > { %p1143_p6 = scmp.ne.s32.totalorder %s1797_s0, %s1142_s20  ;;  %p1144_p7 = pneg %p1599_p1 }
  0x52   : > { %p1149_p4 = scmp.lt.u32.totalorder %s1142_s20, %s1797_s0 }
  0x53   : > { %p1145_p9 = pnand %p1144_p7, %p1143_p6 }
  0x55   : > { %p1146_p3 = pneg %p1145_p9 }
  0x57   : > { %p1151_p2 = pnand %p1149_p4, %p1146_p3 }
  0x59   : > { %1154 = shalt.err (!%p1151_p2)
}
  0x5a   : > { %s1155_s9 = scalar_lea.vmem %s184_s5, 64  ;;  %p1163_p10 = scmp.lt.s32.totalorder %s184_s5, %s184_s5 }
  0x5b   : > { %p1156_p13 = scmp.ne.s32.totalorder %s184_s5, %s1155_s9  ;;  %p1164_p8 = scmp.lt.s32.totalorder %s1155_s9, %s1155_s9 }
  0x5d   : > { %p1158_p0 = pnand %p1156_p13, %p1144_p7  ;;  %p1165_p5 = por %p1164_p8, %p1163_p10 }
  0x5f   : > { %p1159_p12 = pneg %p1158_p0 }
  0x61   : > { %p1166_p11 = pnand %p1165_p5, %p1159_p12 }
  0x63   : > { %1169 = shalt.err (!%p1166_p11)
}
  0x64   : > { %994 = dma.hbm_to_vmem [thread:$0]  (!%p1599_p1), %s1797_s0, 64, %s184_s5, [#allocation3]  }
  0x65   : > { %s1170_s20 = scalar_lea.hbm %s1606_s28, 320  ;;  %p1838_p0 = scmp.ne.s32.totalorder %s1830_s4, 0 }
  0x66   : > { %p1171_p13 = scmp.ne.s32.totalorder %s1606_s28, %s1170_s20  ;;  %s1175_s8 = scalar_lea.hbm %s1799_s2, 640 }
  0x67   : > { %p1172_p6 = pneg %p1838_p0  ;;  %p1176_p10 = scmp.lt.u32.totalorder %s1606_s28, %s1799_s2 }
  0x68   : > { %p1177_p12 = scmp.lt.u32.totalorder %s1175_s8, %s1170_s20  ;;  %p1179_p7 = scmp.lt.u32.totalorder %s1170_s20, %s1606_s28 }
  0x69   : > { %p1173_p8 = pnand %p1172_p6, %p1171_p13 }
  0x6a   : > { %p1178_p5 = por %p1177_p12, %p1176_p10 }
  0x6b   : > { %p1174_p11 = pneg %p1173_p8 }
  0x6c   : > { %p1180_p1 = por %p1179_p7, %p1178_p5 }
  0x6e   : > { %p1181_p9 = pnand %p1180_p1, %p1174_p11 }
  0x70   : > { %1184 = shalt.err (!%p1181_p9)
}
  0x71   : > { %s1185_s5 = scalar_lea.vmem %s1608_s1, 320  ;;  %s1368_s13 = smov [#allocation7]  }
  0x72   : > { %p1186_p3 = scmp.ne.s32.totalorder %s1608_s1, %s1185_s5  ;;  %s1190_s14 = sshll.u32 %s1368_s13, 4  ;;  %s1191_s14 = int_to_ptr.vmem [resolvable:$false] %s1190_s14 }
  0x73   : > { %s1192_s9 = scalar_lea.vmem %s1191_s14, 640  ;;  %p1193_p13 = scmp.lt.s32.totalorder %s1608_s1, %s1191_s14 }
  0x74   : > { %p1188_p4 = pnand %p1186_p3, %p1172_p6  ;;  %p1194_p8 = scmp.lt.s32.totalorder %s1192_s9, %s1185_s5 }
  0x76   : > { %p1189_p2 = pneg %p1188_p4  ;;  %p1195_p10 = por %p1194_p8, %p1193_p13 }
  0x78   : > { %p1196_p12 = pnand %p1195_p10, %p1189_p2 }
  0x7a   : > { %1199 = shalt.err (!%p1196_p12)
}
  0x7b   : > { %s1369_s17 = smov 64   ;;  %s1370_s23 = smov 4  }
  0x7c   : > { %1001 = dma.hbm_to_vmem [thread:$0]  (!%p1838_p0), %s1606_s28, 320, %s1608_s1, %s1523_s21, %s1369_s17, %s1369_s17, %s1370_s23  }
  0x7d   : > { %s915_s20 = sshll.u32 %s1591_s6, 2  ;;  %s916_s10 = sshll.u32 %s1360_s24, 6 }
  0x7e   : > { %s1657_s12 = scalar_lea.hbm %s1800_s3, %s916_s10  ;;  %s239_s30 = scalar_lea.vmem [#allocation8], %s915_s20 }
  0x7f   : > { %s246_s5 = sshll.u32 %s239_s30, 4  ;;  %s236_s13 = scalar_lea.sflag [#allocation9], %s1591_s6  ;;  %s247_s5 = int_to_ptr.vmem [resolvable:$true] %s246_s5 }
  0x80   : > { %s1200_s14 = scalar_lea.hbm %s1657_s12, 64  ;;  %s1205_s28 = scalar_lea.hbm %s1800_s3, 128 }
  0x81   : > { %p1201_p11 = scmp.ne.s32.totalorder %s1657_s12, %s1200_s14  ;;  %p1206_p1 = scmp.lt.u32.totalorder %s1657_s12, %s1800_s3 }
  0x82   : > { %p1207_p9 = scmp.lt.u32.totalorder %s1205_s28, %s1200_s14  ;;  %p1209_p4 = scmp.lt.u32.totalorder %s1200_s14, %s1657_s12 }
  0x83   : > { %p1203_p5 = pnand %p1201_p11, %p1172_p6 }
  0x84   : > { %p1208_p3 = por %p1207_p9, %p1206_p1 }
  0x85   : > { %p1204_p7 = pneg %p1203_p5 }
  0x86   : > { %p1210_p2 = por %p1209_p4, %p1208_p3 }
  0x88   : > { %p1211_p13 = pnand %p1210_p2, %p1204_p7 }
  0x8a   : > { %1214 = shalt.err (!%p1211_p13)
}
  0x8b   : > { %s1215_s6 = scalar_lea.vmem %s247_s5, 64  ;;  %s1371_s23 = smov [#allocation8]  }
  0x8c   : > { %p1216_p8 = scmp.ne.s32.totalorder %s247_s5, %s1215_s6  ;;  %s1220_s20 = sshll.u32 %s1371_s23, 4  ;;  %s1221_s20 = int_to_ptr.vmem [resolvable:$false] %s1220_s20 }
  0x8d   : > { %s1222_s10 = scalar_lea.vmem %s1221_s20, 128  ;;  %p1223_p11 = scmp.lt.s32.totalorder %s247_s5, %s1221_s20 }
  0x8e   : > { %p1218_p10 = pnand %p1216_p8, %p1172_p6  ;;  %p1224_p5 = scmp.lt.s32.totalorder %s1222_s10, %s1215_s6 }
  0x90   : > { %p1219_p12 = pneg %p1218_p10  ;;  %p1225_p1 = por %p1224_p5, %p1223_p11 }
  0x92   : > { %p1226_p9 = pnand %p1225_p1, %p1219_p12 }
  0x94   : > { %1229 = shalt.err (!%p1226_p9)
}
  0x95   : > { %1004 = dma.hbm_to_vmem [thread:$0]  (!%p1838_p0), %s1657_s12, 64, %s247_s5, %s236_s13  }
  0x96   : > { %p1839_p7 = scmp.ne.s32.totalorder %s1836_s26, 0 }
  0x97   : > { %p1840_p3 = scmp.eq.s32.totalorder (!%p1839_p7), %s1552_s29, 0 }
  0x98   : > { %255 = sbr.rel (%p1839_p7) target bundleno = 533 (0x215), region = 36 }
  0x9f   : > { %1303 = dma.done.wait (%p1840_p3), [#allocation3], 64   ;;  %p1841_p6 = pmov %p1840_p3 }
  0xa0   : > { %s261_s11 = sand.u32 1, %s1552_s29   ;;  %s263_s8 = sand.u32 1, %s1340_s19  }
  0xa1   : > { %1305 = vsyncadd (%p1841_p6), [#allocation3], 4294967232  ;;  %s1689_s30 = sshll.u32 %s263_s8, 2  ;;  %s262_s4 = scalar_lea.sflag [#allocation6], %s261_s11 }
  0xa2   : > { %s265_s12 = scalar_lea.vmem [#allocation5], %s1689_s30  ;;  %p1842_p0 = scmp.ne.s32.totalorder %s1831_s22, 0 }
  0xa4   : > { %1307 = dma.done.wait (%p1842_p0), %s262_s4, 64  }
  0xa5   : > { %1309 = vsyncadd (%p1842_p0), %s262_s4, 4294967232  ;;  %s272_s26 = sand.u32 1, %s1328_s16   ;;  %p1843_p4 = scmp.ne.s32.totalorder %s1832_s27, 0 }
  0xa6   : > { %s978_s5 = smul.u32 20, %s272_s26 }
  0xa8   : > { %s1697_s13 = scalar_lea.vmem [#allocation7], %s978_s5 }
  0xa9   : > { %1311 = dma.done.wait (%p1843_p4), %s262_s4, 320  }
  0xaa   : > { %1313 = vsyncadd (%p1843_p4), %s262_s4, 4294966976  ;;  %s920_s29 = sshll.u32 %s272_s26, 2  ;;  %s280_s14 = scalar_lea.sflag [#allocation9], %s272_s26 }
  0xab   : > { %s283_s1 = scalar_lea.vmem [#allocation8], %s920_s29 }
  0xac   : > { %1315 = dma.done.wait (%p1843_p4), %s280_s14, 64  }
  0xad   : > { %1317 = vsyncadd (%p1843_p4), %s280_s14, 4294967232  ;;  %v1372_v0 = vmov 0.0   ;;  %vm1373_vm0 = vmmov 0   ;;  %vm355_vm1 = vcmask 1043456   ;;  %v318_v1 = vld [vmem:[%s265_s12] sm:$0xf]  ;;  %v322_v5 = vlaneseq }
  0xae   : > { %951 = vmatprep.subr.mxu0 %v1372_v0  ;;  %953 = vmatprep.mubr.msk.f32.mxu0 %vm1373_vm0, %v1372_v0  ;;  %vm351_vm2 = vcmask 31744   ;;  %v1374_v2 = vmov 0   ;;  %s1375_s22 = smov 1   ;;  %s1376_s21 = smov 16   ;;  %v348_v3 = vld [vmem:[%s1697_s13] sm:$0xf] }
  0xaf   : > { %956 = vmatprep.subr.mxu1 %v1372_v0  ;;  %958 = vmatprep.mubr.msk.f32.mxu1 %vm1373_vm0, %v1372_v0  ;;  %s1377_s27 = smov 127   ;;  %s1378_s28 = smov 112   ;;  %v742_v4 = vld [vmem:[%s283_s1] sm:$0xf]  ;;  %v323_v6 = vshrl.u32 %v322_v5, 7 }
  0xb0   : > { %1111 = vset.pattern.permute.xlu0 %v1374_v2  ;;  %334 = vrot.lane.b32.xlu1 %v318_v1, %s1376_s21  ;;  %v319_v9 = vld [vmem:[#allocation2] sm:$0xf]  ;;  %v922_v19 = vld [vmem:[%s1697_s13 + $0x4] sm:$0xf]  ;;  %v930_v21 = vld [vmem:[%s1697_s13 + $0xc] sm:$0xf] }
  0xb1   : > { %320 = vrot.lane.b32.xlu0 %v318_v1, %s1375_s22  ;;  %957 = vmatpush3.msk.msra.mxu1 %vm355_vm1, %v318_v1  ;;  %v324_v7 = vsub.s32 0, %v323_v6  ;;  %v338_v8 = vsub.s32 2, %v323_v6  ;;  %v331_v12 = vsub.s32 1, %v323_v6  ;;  %v345_v13 = vsub.s32 3, %v323_v6  ;;  %v927_v26 = vld [vmem:[%s1697_s13 + $0x8] sm:$0xf] }
  0xb2   : > { %966 = vmatprep.subr.mxu1 %v1372_v0  ;;  %959 = vmatmul.mubr.msk.f32.vlgmr.msra.gmra.mrb[0].mxu1 %vm351_vm2, %v348_v3  ;;  %s1844_s9 = sld [smem:[#allocation19_spill]]  ;;  %s1845_s17 = sld [smem:[#allocation18_spill]]  ;;  %v933_v27 = vld [vmem:[%s1697_s13 + $0x10] sm:$0xf] }
  0xb3   : > { %968 = vmatprep.mubr.msk.f32.mxu1 %vm1373_vm0, %v1372_v0  ;;  %v325_v10 = vrot.slane %v319_v9, %v324_v7  ;;  %v339_v11 = vrot.slane %v319_v9, %v338_v8  ;;  %v332_v18 = vrot.slane %v319_v9, %v331_v12  ;;  %v346_v20 = vrot.slane %v319_v9, %v345_v13  ;;  %s317_s10 = scalar_lea.vmem [#allocation10], %s1689_s30  ;;  %s1846_s26 = sld [smem:[#allocation26_spill]] }
  0xb4   : > { %341 = vrot.lane.b32.xlu1 %v318_v1, %s1378_s28  ;;  %s766_s11 = sshll.u32 %s317_s10, 4  ;;  %s751_s13 = scalar_lea.sflag [#allocation4], %s263_s8  ;;  %s1735_s11 = int_to_ptr.vmem [resolvable:$true] %s766_s11 }
  0xb5   : > { %327 = vrot.lane.b32.xlu0 %v318_v1, %s1377_s27  ;;  %s1230_s29 = scalar_lea.vmem %s1735_s11, 64  ;;  %p1847_p13 = scmp.ne.s32.totalorder %s1834_s7, 0 }
  0xb6   : > { %p1231_p2 = scmp.ne.s32.totalorder %s1735_s11, %s1230_s29  ;;  %s1379_s30 = smov [#allocation10]  }
  0xb7   : > { %s1234_s14 = sshll.u32 %s1379_s30, 4  ;;  %s1235_s14 = int_to_ptr.vmem [resolvable:$false] %s1234_s14 }
  0xb8   : > { %s937_s6 = sshll.u32 %s1844_s9, 1  ;;  %p1232_p8 = pnand %p1231_p2, %p1847_p13 }
  0xb9   : > { %745 = vperm.xlu0 %1111, %v742_v4   ;;  %s762_s23 = sadd.s32 %s1845_s17, %s937_s6  ;;  %s1236_s1 = scalar_lea.vmem %s1235_s14, 128 }
  0xba   : > { %s938_s20 = sshll.u32 %s762_s23, 6  ;;  %p1233_p10 = pneg %p1232_p8 }
  0xbb   : > { %s1733_s5 = scalar_lea.hbm %s1846_s26, %s938_s20  ;;  %p1237_p12 = scmp.lt.s32.totalorder %s1735_s11, %s1235_s14 }
  0xbc   : > { %p1238_p11 = scmp.lt.s32.totalorder %s1236_s1, %s1230_s29 }
  0xbe   : > { %p1239_p5 = por %p1238_p11, %p1237_p12 }
  0xc0   : > { %p1240_p1 = pnand %p1239_p5, %p1233_p10 }
 0x122   : > { %v335_v15 = vpop.permute.xlu1 %334 }
 0x123   : > { %v321_v14 = vpop.permute.xlu0 %320  ;;  %v340_v17 = vmul.f32 %v339_v11, %v335_v15 }
 0x124   : > { %v326_v16 = vmul.f32 %v325_v10, %v321_v14 }
 0x125   : > { %967 = vmatpush3.msk.msra.mxu1 %vm355_vm1, %v340_v17 }
 0x126   : > { %952 = vmatpush3.msk.msra.mxu0 %vm355_vm1, %v326_v16  ;;  %v342_v23 = vpop.permute.xlu1 %341  ;;  %969 = vmatmul.mubr.msk.f32.vlgmr.msra.gmra.mrb[2].mxu1 %vm351_vm2, %v930_v21 }
 0x127   : > { %v328_v22 = vpop.permute.xlu0 %327  ;;  %954 = vmatmul.mubr.msk.f32.vlgmr.msra.gmra.mrb[0].mxu0 %vm351_vm2, %v922_v19  ;;  %961 = vmatprep.subr.mxu0 %v1372_v0  ;;  %v347_v25 = vmul.f32 %v346_v20, %v342_v23 }
 0x128   : > { %v333_v24 = vmul.f32 %v332_v18, %v328_v22  ;;  %963 = vmatprep.mubr.msk.f32.mxu0 %vm1373_vm0, %v1372_v0 }
 0x12a   : > { %962 = vmatpush3.msk.msra.mxu0 %vm355_vm1, %v333_v24 }
 0x12b   : > { %964 = vmatmul.mubr.msk.f32.vlgmr.msra.gmra.mrb[2].mxu0 %vm351_vm2, %v927_v26  ;;  %971 = vmatprep.subr.mxu0 %v1372_v0 }
 0x12c   : > { %972 = vmatpush3.msk.msra.mxu0 %vm355_vm1, %v347_v25  ;;  %973 = vmatprep.mubr.msk.f32.mxu0 %vm1373_vm0, %v1372_v0 }
 0x12f   : > { %974 = vmatmul.mubr.msk.f32.vlgmr.msra.gmra.mrb[4].mxu0 %vm351_vm2, %v933_v27 }
 0x138   : > { %v746_v40 = vpop.permute.xlu0 %745 }
 0x185   : > { %v501_v28 = vpop.f32.mrb[0].mxu1 }
 0x186   : > { %v960_v29 = vpop.f32.mrb[1].mxu1 }
 0x1f9   : > { %v658_v33 = vpop.f32.mrb[2].mxu1 }
 0x1fa   : > { %v425_v30 = vpop.f32.mrb[0].mxu0  ;;  %v970_v34 = vpop.f32.mrb[3].mxu1 }
 0x1fb   : > { %v955_v31 = vpop.f32.mrb[1].mxu0  ;;  %v502_v32 = vadd.f32 %v501_v28, %v425_v30 }
 0x1fe   : > { %v579_v35 = vpop.f32.mrb[2].mxu0 }
 0x1ff   : > { %v583_v36 = vadd.f32 %v579_v35, %v502_v32  ;;  %v965_v37 = vpop.f32.mrb[3].mxu0 }
 0x201   : > { %v662_v38 = vadd.f32 %v658_v33, %v583_v36 }
 0x202   : > { %v737_v39 = vpop.f32.mrb[4].mxu0 }
 0x203   : > { %v741_v41 = vadd.f32 %v737_v39, %v662_v38  ;;  %v975_v42 = vpop.f32.mrb[5].mxu0 }
 0x205   : > { %v748_v43 = vadd.f32 %v746_v40, %v741_v41 }
 0x207   : > { %749 = vst [vmem:[%s317_s10] sm:$0xf] %v748_v43 }
 0x208   : > { %1243 = shalt.err (!%p1240_p1)
}
 0x209   : > { %s1244_s8 = scalar_lea.hbm %s1733_s5, 64  ;;  %s1248_s27 = scalar_lea.hbm %s1846_s26, 256 }
 0x20a   : > { %p1245_p9 = scmp.ne.s32.totalorder %s1733_s5, %s1244_s8  ;;  %p1249_p6 = scmp.lt.u32.totalorder %s1733_s5, %s1846_s26 }
 0x20b   : > { %p1250_p0 = scmp.lt.u32.totalorder %s1248_s27, %s1244_s8  ;;  %p1252_p2 = scmp.lt.u32.totalorder %s1244_s8, %s1733_s5 }
 0x20c   : > { %p1246_p7 = pnand %p1245_p9, %p1847_p13 }
 0x20d   : > { %p1251_p4 = por %p1250_p0, %p1249_p6 }
 0x20e   : > { %p1247_p3 = pneg %p1246_p7 }
 0x20f   : > { %p1253_p8 = por %p1252_p2, %p1251_p4 }
 0x211   : > { %p1254_p10 = pnand %p1253_p8, %p1247_p3 }
 0x213   : > { %1257 = shalt.err (!%p1254_p10)
}
 0x214   : > { %989 = dma.vmem_to_hbm [thread:$0]  (%p1847_p13), %s1735_s11, 64, %s1733_s5, %s751_s13  }
 0x215 PF: > { %p1012_p12 = scmp.ge.s32.totalorder %s1364_s25, 2  ;;  %s778_s17 = sand.u32 1, %s1336_s18  }
 0x216   : > { %p1848_p11 = scmp.ne.s32.totalorder %s1835_s15, 0  ;;  %s779_s6 = scalar_lea.sflag [#allocation4], %s778_s17 }
 0x218   : > { %p1006_p5 = pnand %p1012_p12, %p1848_p11 }
 0x21a   : > { %1319 = dma.done.wait (!%p1006_p5), %s779_s6, 64  }
 0x21b   : > { %1321 = vsyncadd (!%p1006_p5), %s779_s6, 4294967232  ;;  %s24_s25 = sadd.s32 1, %s1364_s25   ;;  %s1849_s23 = sld [smem:[#allocation16_spill]] }
 0x21c   : > { %p21_p1 = scmp.ge.s32.totalorder %s24_s25, 6   ;;  %s1850_s17 = sld [smem:[#allocation23_spill]] }
 0x21d   : > { %s1851_s7 = sld [smem:[#allocation17_spill]]  ;;  %s1852_s20 = sld [smem:[#allocation24_spill]] }
 0x21e   : > { %s1853_s21 = sld [smem:[#allocation20_spill]]  ;;  %s1854_s10 = sld [smem:[#allocation21_spill]] }
 0x21f   : > { %s1855_s11 = sld [smem:[#allocation22_spill]]  ;;  %s1856_s15 = smov %s1328_s16 }
 0x220   : > { %s1858_s18 = smov %s1340_s19  ;;  %s1860_s22 = smov %s1360_s24 }
 0x221   : > { %s1857_s16 = smov %s1849_s23  ;;  %23 = sbr.rel (!%p21_p1) target bundleno = 15 (0xf), region = 114 }
 0x223   : > { %s1859_s19 = smov %s1851_s7 }
 0x224   : > { %s1861_s23 = smov %s1854_s10 }
 0x225   : > { %s1862_s24 = smov %s1855_s11 }
 0x228   :  { %784 = vsyncpa [#allocation3], 1 }
 0x229   :  { %786 = vsyncpa [#allocation3 + $0x1], 1 }
 0x22a   :  { %787 = vsyncpa [#allocation6], 1 }
 0x22b   :  { %789 = vsyncpa [#allocation6 + $0x1], 1 }
 0x22c   :  { %790 = vsyncpa [#allocation9], 1 }
 0x22d   :  { %792 = vsyncpa [#allocation9 + $0x1], 1 }
 0x22e   :  { %793 = vsyncpa [#allocation4], 1 }
 0x22f   :  { %795 = vsyncpa [#allocation4 + $0x1], 1 }

</bundles_post_ra>
